<compile_context>
chip_gen: v7x
topology: tpu7x:2x2x1
jax: 0.10.0
libtpu: 0.0.40
codegen_flags: <defaults>
</compile_context>

<pallas_src>
import jax
import jax.numpy as jnp
from jax.experimental import pallas as pl
from jax.experimental.pallas import tpu as pltpu


def _round_up(x, m):
    return ((x + m - 1) // m) * m


def _complex_mode_matmul_kernel(lhs_ref, rhs_ref, out_ref):
    """Mode-batched real matmul on the MXU (complex product in packed form).

    lhs_ref : (TM, TB, 2*Cin)      [xr | xi] along the contraction axis
    rhs_ref : (TM, 2*Cin, 2*Cout)  [[wr, wi], [-wi, wr]] packed weights
    out_ref : (TM, TB, 2*Cout)     [out_real | out_imag]
    """
    out = jax.lax.dot_general(
        lhs_ref[...],
        rhs_ref[...],
        dimension_numbers=(((2,), (1,)), ((0,), (0,))),  # contract 2*Cin, batch modes
        preferred_element_type=jnp.float32,
    )
    out_ref[...] = out.astype(out_ref.dtype)


def complex_matmul_1d_pallas(x_ft, weights, *, compute_dtype=jnp.float32):
    """torch.einsum('bik,iok->bok') for complex tensors via an MXU Pallas kernel.

    x_ft    : (B, Cin, M) complex
    weights : (Cin, Cout, M) complex
    returns : (B, Cout, M) complex64

    compute_dtype: use jnp.bfloat16 on v6e/v7x for 2x MXU rate / half the DMA
    bytes (accumulation stays fp32); default fp32 for bit-tight validation.
    """
    B, Cin, M = x_ft.shape
    Cout = weights.shape[1]

    xr = jnp.real(x_ft).astype(compute_dtype)
    xi = jnp.imag(x_ft).astype(compute_dtype)
    wr = jnp.real(weights).astype(compute_dtype)
    wi = jnp.imag(weights).astype(compute_dtype)

    # Pack real/imag along the contraction axis (one stream each for lhs/rhs):
    #   (lhs @ rhs)[m, b, :Cout]  = sum_i xr*wr - xi*wi   (real)
    #   (lhs @ rhs)[m, b, Cout:]  = sum_i xr*wi + xi*wr   (imag)
    lhs = jnp.transpose(jnp.concatenate([xr, xi], axis=1), (2, 0, 1))      # (M, B, 2Cin)
    rhs = jnp.transpose(
        jnp.concatenate(
            [jnp.concatenate([wr, wi], axis=1),
             jnp.concatenate([-wi, wr], axis=1)],
            axis=0),
        (2, 0, 1))                                                          # (M, 2Cin, 2Cout)

    # ---- tiling: modes on the outer grid axis, batch on the inner axis -----
    TB = min(_round_up(B, 8), 64)          # batch tile (sublane axis -> mult of 8)
    TM = min(M, 8)                         # mode tile (batched matmul axis)
    B_pad = _round_up(B, TB)
    M_pad = _round_up(M, TM)

    if (B_pad, M_pad) != (B, M):
        lhs = jnp.pad(lhs, ((0, M_pad - M), (0, B_pad - B), (0, 0)))
        rhs = jnp.pad(rhs, ((0, M_pad - M), (0, 0), (0, 0)))

    grid = (M_pad // TM, B_pad // TB)      # batch innermost -> weights stay resident

    out = pl.pallas_call(
        _complex_mode_matmul_kernel,
        grid=grid,
        in_specs=[
            pl.BlockSpec((TM, TB, 2 * Cin), lambda m, b: (m, b, 0)),
            # Weight block index depends only on the mode tile: it is not
            # re-fetched while the inner batch loop runs.
            pl.BlockSpec((TM, 2 * Cin, 2 * Cout), lambda m, b: (m, 0, 0)),
        ],
        out_specs=pl.BlockSpec((TM, TB, 2 * Cout), lambda m, b: (m, b, 0)),
        out_shape=jax.ShapeDtypeStruct((M_pad, B_pad, 2 * Cout), jnp.float32),
        compiler_params=pltpu.CompilerParams(
            dimension_semantics=("parallel", "parallel")),
    )(lhs, rhs)

    out = out[:M, :B, :]                                   # drop padding
    out_r = jnp.transpose(out[:, :, :Cout], (1, 2, 0))      # (B, Cout, M)
    out_i = jnp.transpose(out[:, :, Cout:], (1, 2, 0))
    return jax.lax.complex(out_r, out_i)


def init_spectral_weights(key, in_channels, out_channels, modes):
    """Deterministic stand-in for scale * torch.randn(Cin, Cout, modes, cfloat)."""
    scale = 1.0 / (in_channels * out_channels)
    kr, ki = jax.random.split(key)
    w_real = jax.random.normal(kr, (in_channels, out_channels, modes), jnp.float32)
    w_imag = jax.random.normal(ki, (in_channels, out_channels, modes), jnp.float32)
    return scale * (w_real + 1j * w_imag).astype(jnp.complex64)


def spectral_conv1d(x, weights, modes, *, compute_dtype=jnp.float32):
    """Forward pass matching SpectralConv1d.forward.

    x       : (B, C_in, N_x) float32
    weights : (C_in, C_out, modes) complex64
    returns : (B, C_out, N_x) float32 (real space)
    """
    B, C_in, N_x = x.shape

    # TODO(synk): rFFT / irFFT have no in-kernel Pallas equivalent; they run in plain JAX.
    x_ft = jnp.fft.rfft(x, norm="ortho")                              # (B, Cin, N//2+1)

    out_modes = complex_matmul_1d_pallas(
        x_ft[:, :, :modes], weights, compute_dtype=compute_dtype)     # (B, Cout, modes)

    # Zero-pad the untouched high-frequency modes in a single pass.
    out_ft = jnp.pad(out_modes, ((0, 0), (0, 0), (0, N_x // 2 + 1 - modes)))

    return jnp.fft.irfft(out_ft, n=N_x, norm="ortho").astype(jnp.float32)


def spectral_conv1d_reference(x, weights, modes):
    """Pure-JAX reference (mirrors the PyTorch module) for validation."""
    B, C_in, N_x = x.shape
    C_out = weights.shape[1]
    x_ft = jnp.fft.rfft(x, norm="ortho")
    out_modes = jnp.einsum("bik,iok->bok", x_ft[:, :, :modes], weights)
    out_ft = jnp.zeros((B, C_out, N_x // 2 + 1), dtype=jnp.complex64)
    out_ft = out_ft.at[:, :, :modes].set(out_modes)
    return jnp.fft.irfft(out_ft, n=N_x, norm="ortho").astype(jnp.float32)


if __name__ == "__main__":
    B, C_in, C_out, N_x, modes = 2, 4, 8, 16, 6

    key = jax.random.PRNGKey(0)
    k_x, k_w = jax.random.split(key)

    x = jax.random.normal(k_x, (B, C_in, N_x), jnp.float32)
    weights = init_spectral_weights(k_w, C_in, C_out, modes)

    y = jax.block_until_ready(spectral_conv1d(x, weights, modes))
    y_ref = jax.block_until_ready(spectral_conv1d_reference(x, weights, modes))

    assert y.shape == (B, C_out, N_x), y.shape
    assert y.dtype == jnp.float32, y.dtype
    assert jnp.allclose(y, y_ref, atol=1e-5, rtol=1e-5), "mismatch vs. reference"

    print("KERNEL_OK")
</pallas_src>

<mosaic_0001>
module attributes {stable_mosaic.version = 11 : i64} {
  func.func @_complex_mode_matmul_kernel(%arg0: i32, %arg1: i32, %arg2: memref<6x8x8xf32, #tpu.memory_space<vmem>>, %arg3: memref<6x8x16xf32, #tpu.memory_space<vmem>>, %arg4: memref<6x8x16xf32, #tpu.memory_space<vmem>>) attributes {dimension_semantics = [#tpu.dimension_semantics<parallel>, #tpu.dimension_semantics<parallel>], iteration_bounds = array<i64: 1, 1>, scalar_prefetch = 0 : i64, scratch_operands = 0 : i64, tpu.core_type = #tpu.core_type<tc>, window_params = [{transform_indices = @transform_0, window_bounds = array<i64: 6, 8, 8>}, {transform_indices = @transform_1, window_bounds = array<i64: 6, 8, 16>}, {transform_indices = @transform_2, window_bounds = array<i64: 6, 8, 16>}]} {
    %c0 = arith.constant 0 : index
    %c0_0 = arith.constant 0 : index
    %c0_1 = arith.constant 0 : index
    %0 = vector.load %arg2[%c0, %c0_0, %c0_1] : memref<6x8x8xf32, #tpu.memory_space<vmem>>, vector<6x8x8xf32>
    %c0_2 = arith.constant 0 : index
    %c0_3 = arith.constant 0 : index
    %c0_4 = arith.constant 0 : index
    %1 = vector.load %arg3[%c0_2, %c0_3, %c0_4] : memref<6x8x16xf32, #tpu.memory_space<vmem>>, vector<6x8x16xf32>
    %cst = arith.constant dense<0.000000e+00> : vector<6x8x16xf32>
    %2 = tpu.matmul %0, %1, %cst {dimension_numbers = #tpu.dot_dimension_numbers<[2], [1], [1], [2], [0, 0, 0, 1, 1, 2], [0], [0]>} : vector<6x8x8xf32>, vector<6x8x16xf32>, vector<6x8x16xf32> -> vector<6x8x16xf32>
    %c0_5 = arith.constant 0 : index
    %c0_6 = arith.constant 0 : index
    %c0_7 = arith.constant 0 : index
    %3 = vector.load %arg4[%c0_5, %c0_6, %c0_7] : memref<6x8x16xf32, #tpu.memory_space<vmem>>, vector<6x8x16xf32>
    tpu.vector_store %arg4[%c0_5, %c0_6, %c0_7], %2 {strides = array<i32>} : memref<6x8x16xf32, #tpu.memory_space<vmem>>, vector<6x8x16xf32>,
    return
  }
  func.func @transform_0(%arg0: i32, %arg1: i32) -> (i32, i32, i32) {
    %c0_i32 = arith.constant 0 : i32
    %c0_i32_0 = arith.constant 0 : i32
    return %arg0, %arg1, %c0_i32 : i32, i32, i32
  }
  func.func @transform_1(%arg0: i32, %arg1: i32) -> (i32, i32, i32) {
    %c0_i32 = arith.constant 0 : i32
    %c0_i32_0 = arith.constant 0 : i32
    %c0_i32_1 = arith.constant 0 : i32
    return %arg0, %c0_i32, %c0_i32_0 : i32, i32, i32
  }
  func.func @transform_2(%arg0: i32, %arg1: i32) -> (i32, i32, i32) {
    %c0_i32 = arith.constant 0 : i32
    %c0_i32_0 = arith.constant 0 : i32
    return %arg0, %arg1, %c0_i32 : i32, i32, i32
  }
}

</mosaic_0001>

<bundles_post_ra>
// kernel: tpu_custom_call.1
= control target key start
LH: loop header
LB: loop body
LE: loop exit
PB: predicated region body
PF: predicated region fallthrough
CT: control target
= control target key end

     0   :  { %7 = vsyncpa [#allocation3], 0  ;;  %s728_s0 = inlined_call_operand.hbm [shape: f32[6,8,8], index: 0, kind: input, shape index: {}]   ;;  %s729_s1 = inlined_call_operand.hbm [shape: f32[6,8,16], index: 1, kind: input, shape index: {}]   ;;  %s730_s2 = inlined_call_operand.hbm [shape: f32[6,8,16], index: 2, kind: output, shape index: {}]  }
   0x1   :  { %8 = vsyncpa [#allocation6], 0 }
   0x2   :  { %9 = vsyncpa [#allocation4], 0  ;;  %s643_s9 = smov [#allocation2]   ;;  %s571_s13 = scalar_lea.hbm %s728_s0, 768 }
   0x3   :  { %s15_s10 = sshll.u32 %s643_s9, 4  ;;  %p572_p0 = scmp.ne.s32.totalorder %s728_s0, %s571_s13  ;;  %s16_s10 = int_to_ptr.vmem [resolvable:$true] %s15_s10 }
   0x4   :  { %p575_p1 = scmp.lt.u32.totalorder %s571_s13, %s728_s0 }
   0x6   :  { %p577_p2 = pnand %p575_p1, %p572_p0 }
   0x8   :  { %580 = shalt.err (!%p577_p2)
}
   0x9   :  { %s581_s18 = scalar_lea.vmem %s16_s10, 768  ;;  %p586_p4 = scmp.lt.s32.totalorder %s16_s10, %s16_s10 }
   0xa   :  { %p582_p3 = scmp.ne.s32.totalorder %s16_s10, %s581_s18  ;;  %p587_p5 = scmp.lt.s32.totalorder %s581_s18, %s581_s18 }
   0xc   :  { %p588_p6 = por %p587_p5, %p586_p4 }
   0xe   :  { %p589_p7 = pnand %p588_p6, %p582_p3 }
  0x10   :  { %592 = shalt.err (!%p589_p7)
}
  0x11   :  { %s644_s19 = smov 128   ;;  %s645_s20 = smov 8  }
  0x12   :  { %21 = dma.hbm_to_vmem [thread:$0]  %s728_s0, 768, %s16_s10, [#allocation3], %s644_s19, %s644_s19, %s645_s20  }
  0x13   :  { %s646_s23 = smov [#allocation5]   ;;  %s593_s27 = scalar_lea.hbm %s729_s1, 768 }
  0x14   :  { %s27_s24 = sshll.u32 %s646_s23, 4  ;;  %p594_p8 = scmp.ne.s32.totalorder %s729_s1, %s593_s27  ;;  %s28_s24 = int_to_ptr.vmem [resolvable:$true] %s27_s24 }
  0x15   :  { %p597_p9 = scmp.lt.u32.totalorder %s593_s27, %s729_s1 }
  0x17   :  { %p599_p10 = pnand %p597_p9, %p594_p8 }
  0x19   :  { %602 = shalt.err (!%p599_p10)
}
  0x1a   :  { %s603_s4 = scalar_lea.vmem %s28_s24, 768  ;;  %p608_p12 = scmp.lt.s32.totalorder %s28_s24, %s28_s24 }
  0x1b   :  { %p604_p11 = scmp.ne.s32.totalorder %s28_s24, %s603_s4  ;;  %p609_p13 = scmp.lt.s32.totalorder %s603_s4, %s603_s4 }
  0x1d   :  { %p610_p0 = por %p609_p13, %p608_p12 }
  0x1f   :  { %p611_p1 = pnand %p610_p0, %p604_p11 }
  0x21   :  { %614 = shalt.err (!%p611_p1)
}
  0x22   :  { %33 = dma.hbm_to_vmem [thread:$0]  %s729_s1, 768, %s28_s24, [#allocation6], %s644_s19, %s644_s19, %s645_s20  }
  0x23   :  { %637 = dma.done.wait [#allocation3], 768  }
  0x24   :  { %638 = vsyncadd [#allocation3], 4294966528 }
  0x25   :  { %639 = dma.done.wait [#allocation6], 768  }
  0x26   :  { %640 = vsyncadd [#allocation6], 4294966528  ;;  %v647_v0 = vmov 0.0   ;;  %vm648_vm0 = vmmov 0   ;;  %vm52_vm1 = vcmask 64512   ;;  %v46_v1 = vld [vmem:[#allocation5] sm:$0xff] }
  0x27   :  { %534 = vmatprep.subr.mxu0 %v647_v0  ;;  %539 = vmatprep.subr.mxu1 %v647_v0  ;;  %v47_v2 = vld [vmem:[#allocation5 + $0x8] sm:$0xff]  ;;  %v40_v3 = vld [vmem:[#allocation2] sm:$0xff]  ;;  %v41_v4 = vld [vmem:[#allocation2 + $0x8] sm:$0xff]  ;;  %vm491_vm2 = vcmask 130048   ;;  %s649_s1 = smov [#allocation7]  }
  0x28   :  { %536 = vmatprep.mubr.msk.f32.mxu0 %vm648_vm0, %v647_v0  ;;  %541 = vmatprep.mubr.msk.f32.mxu1 %vm648_vm0, %v647_v0  ;;  %v48_v5 = vld [vmem:[#allocation5 + $0x10] sm:$0xff]  ;;  %v49_v6 = vld [vmem:[#allocation5 + $0x18] sm:$0xff]  ;;  %v42_v7 = vld [vmem:[#allocation2 + $0x10] sm:$0xff]  ;;  %s503_s6 = sshll.u32 %s649_s1, 4  ;;  %s504_s6 = int_to_ptr.vmem [resolvable:$true] %s503_s6 }
  0x29   :  { %535 = vmatpush3.msra.mxu0 %v46_v1  ;;  %540 = vmatpush3.msra.mxu1 %v47_v2  ;;  %v43_v8 = vld [vmem:[#allocation2 + $0x18] sm:$0xff]  ;;  %v50_v9 = vld [vmem:[#allocation5 + $0x20] sm:$0xff]  ;;  %v44_v11 = vld [vmem:[#allocation2 + $0x20] sm:$0xff]  ;;  %s615_s7 = scalar_lea.vmem %s504_s6, 768  ;;  %p620_p3 = scmp.lt.s32.totalorder %s504_s6, %s504_s6 }
  0x2a   :  { %537 = vmatmul.mubr.msk.f32.vlgmr.msra.gmra.mrb[0].mxu0 %vm52_vm1, %v40_v3  ;;  %542 = vmatmul.mubr.msk.f32.vlgmr.msra.gmra.mrb[0].mxu1 %vm52_vm1, %v41_v4  ;;  %v51_v10 = vld [vmem:[#allocation5 + $0x28] sm:$0xff]  ;;  %v45_v12 = vld [vmem:[#allocation2 + $0x28] sm:$0xff]  ;;  %p616_p2 = scmp.ne.s32.totalorder %s504_s6, %s615_s7  ;;  %p621_p4 = scmp.lt.s32.totalorder %s615_s7, %s615_s7 }
  0x2b   :  { %544 = vmatprep.subr.mxu0 %v647_v0  ;;  %549 = vmatprep.subr.mxu1 %v647_v0 }
  0x2c   :  { %545 = vmatpush3.msra.mxu0 %v48_v5  ;;  %550 = vmatpush3.msra.mxu1 %v49_v6  ;;  %p622_p5 = por %p621_p4, %p620_p3 }
  0x2d   :  { %546 = vmatprep.mubr.msk.f32.mxu0 %vm648_vm0, %v647_v0  ;;  %551 = vmatprep.mubr.msk.f32.mxu1 %vm648_vm0, %v647_v0 }
  0x2e   :  { %547 = vmatmul.mubr.msk.f32.vlgmr.msra.gmra.mrb[2].mxu0 %vm52_vm1, %v42_v7  ;;  %552 = vmatmul.mubr.msk.f32.vlgmr.msra.gmra.mrb[2].mxu1 %vm52_vm1, %v43_v8  ;;  %p623_p6 = pnand %p622_p5, %p616_p2 }
  0x2f   :  { %554 = vmatprep.subr.mxu0 %v647_v0  ;;  %559 = vmatprep.subr.mxu1 %v647_v0 }
  0x30   :  { %555 = vmatpush3.msra.mxu0 %v50_v9  ;;  %560 = vmatpush3.msra.mxu1 %v51_v10 }
  0x31   :  { %556 = vmatprep.mubr.msk.f32.mxu0 %vm648_vm0, %v647_v0  ;;  %561 = vmatprep.mubr.msk.f32.mxu1 %vm648_vm0, %v647_v0 }
  0x32   :  { %557 = vmatmul.mubr.msk.f32.vlgmr.msra.gmra.mrb[4].mxu0 %vm52_vm1, %v44_v11  ;;  %562 = vmatmul.mubr.msk.f32.vlgmr.msra.gmra.mrb[4].mxu1 %vm52_vm1, %v45_v12 }
  0xfd   :  { %v122_v13 = vpop.f32.mrb[0].mxu0  ;;  %v195_v14 = vpop.f32.mrb[0].mxu1 }
  0xfe   :  { %492 = vst.msk [vmem:[#allocation7] sm:$0xff] %vm491_vm2, %v122_v13  ;;  %493 = vst.msk [vmem:[#allocation7 + $0x8] sm:$0xff] %vm491_vm2, %v195_v14  ;;  %v538_v15 = vpop.f32.mrb[1].mxu0  ;;  %v543_v16 = vpop.f32.mrb[1].mxu1 }
 0x101   :  { %v268_v17 = vpop.f32.mrb[2].mxu0  ;;  %v341_v18 = vpop.f32.mrb[2].mxu1 }
 0x102   :  { %494 = vst.msk [vmem:[#allocation7 + $0x10] sm:$0xff] %vm491_vm2, %v268_v17  ;;  %495 = vst.msk [vmem:[#allocation7 + $0x18] sm:$0xff] %vm491_vm2, %v341_v18  ;;  %v548_v19 = vpop.f32.mrb[3].mxu0  ;;  %v553_v20 = vpop.f32.mrb[3].mxu1 }
 0x105   :  { %v414_v21 = vpop.f32.mrb[4].mxu0  ;;  %v487_v22 = vpop.f32.mrb[4].mxu1 }
 0x106   :  { %496 = vst.msk [vmem:[#allocation7 + $0x20] sm:$0xff] %vm491_vm2, %v414_v21  ;;  %497 = vst.msk [vmem:[#allocation7 + $0x28] sm:$0xff] %vm491_vm2, %v487_v22  ;;  %v558_v23 = vpop.f32.mrb[5].mxu0  ;;  %v563_v24 = vpop.f32.mrb[5].mxu1 }
 0x107   :  { %626 = shalt.err (!%p623_p6)
}
 0x108   :  { %s627_s10 = scalar_lea.hbm %s730_s2, 768 }
 0x109   :  { %p628_p7 = scmp.ne.s32.totalorder %s730_s2, %s627_s10  ;;  %p631_p8 = scmp.lt.u32.totalorder %s627_s10, %s730_s2 }
 0x10b   :  { %p633_p9 = pnand %p631_p8, %p628_p7 }
 0x10d   :  { %636 = shalt.err (!%p633_p9)
}
 0x10e   :  { %509 = dma.vmem_to_hbm [thread:$0]  %s504_s6, 768, %s730_s2, [#allocation4], %s644_s19, %s644_s19, %s645_s20  }
 0x10f   :  { %641 = dma.done.wait [#allocation4], 768  }
 0x110   :  { %642 = vsyncadd [#allocation4], 4294966528 }
 0x111   :  { %513 = vsyncpa [#allocation3], 1 }
 0x112   :  { %514 = vsyncpa [#allocation6], 1 }
 0x113   :  { %515 = vsyncpa [#allocation4], 1 }

</bundles_post_ra>
